<compile_context>
chip_gen: v6e
topology: v6e:2x2x1
jax: 0.10.0
libtpu: 0.0.40
codegen_flags: <defaults>
</compile_context>

<pallas_src>
import functools
import math

import jax
import jax.numpy as jnp
from jax.experimental import pallas as pl
from jax.experimental.pallas import tpu as pltpu


# ---------------------------------------------------------------------------
# Kernels
# ---------------------------------------------------------------------------
def _rope_kernel_single(cos_ref, sin_ref, q_ref, k_ref, qo_ref, ko_ref, *,
                        half, compute_dtype):
    """L == D (head dim already a multiple of 128): one XLU roll per tensor.

    sin is sign-folded ([-sin | +sin]) so rotate_half is a pure lane roll.
    """
    cos = cos_ref[...]
    sin = sin_ref[...]

    def apply(x_ref, o_ref):
        x3 = x_ref[...].astype(compute_dtype)          # (bh, tb, L)
        bh, tb, lanes = x3.shape
        x2 = x3.reshape(bh * tb, lanes)                # leading-dim collapse (free)
        rot = pltpu.roll(x2, shift=half, axis=1).reshape(bh, tb, lanes)
        o_ref[...] = (x3 * cos + rot * sin).astype(o_ref.dtype)

    apply(q_ref, qo_ref)
    apply(k_ref, ko_ref)


def _rope_kernel_packed(cos_ref, sin_lo_ref, sin_hi_ref, q_ref, k_ref,
                        qo_ref, ko_ref, *, half, compute_dtype):
    """R time steps of one head packed along the lane axis (L = R*D).

    sin_lo / sin_hi are sign- and half-mask-folded in the wrapper (zeros
    outside their half-lanes), so the kernel needs no iota/mod/cmp/select:
        out = x*cos + roll(x, -half)*sin_lo + roll(x, +half)*sin_hi
    """
    cos = cos_ref[...]
    sin_lo = sin_lo_ref[...]
    sin_hi = sin_hi_ref[...]

    def apply(x_ref, o_ref):
        x3 = x_ref[...].astype(compute_dtype)          # (bh, tb, L)
        bh, tb, lanes = x3.shape
        x2 = x3.reshape(bh * tb, lanes)
        lo = pltpu.roll(x2, shift=lanes - half, axis=1).reshape(bh, tb, lanes)
        hi = pltpu.roll(x2, shift=half, axis=1).reshape(bh, tb, lanes)
        o_ref[...] = (x3 * cos + lo * sin_lo + hi * sin_hi).astype(o_ref.dtype)

    apply(q_ref, qo_ref)
    apply(k_ref, ko_ref)


# ---------------------------------------------------------------------------
# Tables & tiling helpers
# ---------------------------------------------------------------------------
def _device_kind() -> str:
    try:
        return jax.devices()[0].device_kind.lower()
    except Exception:
        return ""


def _pick_compute_dtype(data_dtype):
    """bf16 compute on chips with a bf16 VPU; f32 everywhere else."""
    if jnp.dtype(data_dtype) == jnp.dtype(jnp.bfloat16):
        if "v5" in _device_kind():       # v5 generation VPU has no native bf16
            return jnp.float32
        return jnp.bfloat16
    return jnp.float32


def _data_tile_bytes() -> int:
    """Per-stream per-buffer tile budget. Bigger on v7x (3.2 TB/s HBM)."""
    kind = _device_kind()
    if ("v7" in kind) or ("tpu7" in kind) or ("7x" in kind):
        return 2 << 20
    return 1 << 20


_VMEM_LIMIT_BYTES = 48 << 20   # <= 75% of v7x's 64 MiB; far below 128 MiB chips


def _sublane_align(itemsize: int) -> int:
    # f32 -> 8, bf16/f16 -> 16, int8/fp8 -> 32 (sublane packing of the dtype)
    return max(8, 32 // max(1, itemsize))


def _pick_t_block(Tp, L, bytes_per_el, align, budget):
    cap = max(align, budget // (L * bytes_per_el))
    if Tp <= cap:
        return Tp                                  # full axis — always legal
    cap_aligned = (cap // align) * align
    d = cap_aligned
    while d >= align:                              # prefer a dividing block
        if Tp % d == 0:
            return d
        d -= align
    # No dividing aligned block fits the budget: use a capped aligned block;
    # the grid uses cdiv and Pallas masks the ragged tail block.
    return cap_aligned


def _pick_bh_block(BH, t_block, L, bytes_per_el, budget):
    cap = max(1, budget // (t_block * L * bytes_per_el))
    b = min(BH, cap)
    while b > 1 and BH % b != 0:
        b -= 1
    return b


def _build_tables(T, D, R, base, table_dtype, packed):
    """cos / (sign,mask-folded) sin tables, reshaped to the packed (Tp, L) layout."""
    Dh = D // 2
    i = jnp.arange(Dh, dtype=jnp.float32)
    theta = jnp.asarray(base, jnp.float32) ** (-2.0 * i / D)   # base**(-2*(i-1)/D)
    theta = jnp.concatenate([theta, theta], axis=-1)           # (D,)
    m = jnp.arange(T, dtype=jnp.float32)[:, None]              # (T, 1)
    ang = m * theta[None, :]                                   # (T, D)
    cos = jnp.cos(ang)
    sign = jnp.concatenate([-jnp.ones((Dh,), jnp.float32),
                            jnp.ones((Dh,), jnp.float32)])
    sin_signed = jnp.sin(ang) * sign[None, :]                  # sign folded

    Tp, L = T // R, R * D
    cos_p = cos.reshape(Tp, L).astype(table_dtype)
    if not packed:
        return (cos_p, sin_signed.reshape(Tp, L).astype(table_dtype))

    lo_mask = jnp.concatenate([jnp.ones((Dh,), bool), jnp.zeros((Dh,), bool)])
    sin_lo = jnp.where(lo_mask[None, :], sin_signed, 0.0)      # mask folded
    sin_hi = jnp.where(lo_mask[None, :], 0.0, sin_signed)
    return (cos_p,
            sin_lo.reshape(Tp, L).astype(table_dtype),
            sin_hi.reshape(Tp, L).astype(table_dtype))


# ---------------------------------------------------------------------------
# Wrapper
# ---------------------------------------------------------------------------
def _rotary_impl(q, k, rope_theta=10000.0):
    """q, k: (B, H, T, D). Returns (q_rot, k_rot), same shape/dtype."""
    B, H, T, D = q.shape
    assert k.shape == q.shape, "q and k must have the same shape"
    assert q.dtype == k.dtype, "q and k must have the same dtype"
    assert D % 2 == 0, "head dim must be even for RoPE"

    dtype = q.dtype
    itemsize = jnp.dtype(dtype).itemsize
    compute_dtype = _pick_compute_dtype(dtype)
    table_dtype = compute_dtype
    bytes_per_el = max(itemsize, jnp.dtype(compute_dtype).itemsize)

    # Lane packing: R consecutive time steps of a head share one lane row, so
    # the last dim L = R*D is always a dense multiple of 128 (unmasked stores).
    R = 128 // math.gcd(D, 128)
    packed = R > 1
    Tpad = ((T + R - 1) // R) * R
    if Tpad != T:                                   # ragged T: cheap one-time pad
        q = jnp.pad(q, ((0, 0), (0, 0), (0, Tpad - T), (0, 0)))
        k = jnp.pad(k, ((0, 0), (0, 0), (0, Tpad - T), (0, 0)))

    BH, Tp, L = B * H, Tpad // R, R * D
    qp = q.reshape(BH, Tp, L)                       # contiguous, free reshape
    kp = k.reshape(BH, Tp, L)
    tables = _build_tables(Tpad, D, R, rope_theta, table_dtype, packed)
    n_tab = len(tables)

    # Tiling: dtype-aware budget, sublane-aligned t_block, biggest tile that fits.
    budget = _data_tile_bytes()
    align = _sublane_align(itemsize)
    t_block = _pick_t_block(Tp, L, bytes_per_el, align, budget)
    bh_block = _pick_bh_block(BH, t_block, L, bytes_per_el, budget)
    # Megacore (v7x has 2 TCs): keep at least 2 grid steps on a parallel axis.
    while pl.cdiv(Tp, t_block) * pl.cdiv(BH, bh_block) < 2 and bh_block > 1:
        bh_block = pl.cdiv(bh_block, 2)
        while bh_block > 1 and BH % bh_block != 0:
            bh_block -= 1

    grid = (pl.cdiv(Tp, t_block), pl.cdiv(BH, bh_block))   # bh innermost:
    data_spec = pl.BlockSpec((bh_block, t_block, L), lambda t, i: (i, t, 0))
    table_spec = pl.BlockSpec((t_block, L), lambda t, i: (t, 0))  # DMA'd once / T-tile

    kernel = functools.partial(
        _rope_kernel_packed if packed else _rope_kernel_single,
        half=D // 2, compute_dtype=compute_dtype)

    qo, ko = pl.pallas_call(
        kernel,
        out_shape=(jax.ShapeDtypeStruct((BH, Tp, L), dtype),
                   jax.ShapeDtypeStruct((BH, Tp, L), dtype)),
        grid_spec=pltpu.PrefetchScalarGridSpec(
            num_scalar_prefetch=0,
            grid=grid,
            in_specs=[table_spec] * n_tab + [data_spec, data_spec],
            out_specs=(data_spec, data_spec),
        ),
        input_output_aliases={n_tab: 0, n_tab + 1: 1},   # q->q_out, k->k_out
        compiler_params=pltpu.CompilerParams(
            dimension_semantics=("parallel", "parallel"),
            vmem_limit_bytes=_VMEM_LIMIT_BYTES),
    )(*tables, qp, kp)

    qo = qo.reshape(B, H, Tpad, D)
    ko = ko.reshape(B, H, Tpad, D)
    if Tpad != T:
        qo = qo[:, :, :T, :]
        ko = ko[:, :, :T, :]
    # TODO(synk): the PyTorch module hard-codes positions 0..T-1; no
    # position_ids / KV-cache offset support is implemented (same as the spec).
    return qo, ko


rotary_position_embeddings = jax.jit(_rotary_impl, static_argnames=("rope_theta",))


# ---------------------------------------------------------------------------
# Reference (HF rotate_half convention, f32 math) + tests
# ---------------------------------------------------------------------------
def _reference(q, k, rope_theta=10000.0):
    B, H, T, D = q.shape
    i = jnp.arange(D // 2, dtype=jnp.float32)
    theta = jnp.asarray(rope_theta, jnp.float32) ** (-2.0 * i / D)
    theta = jnp.concatenate([theta, theta], axis=-1)
    m = jnp.arange(T, dtype=jnp.float32)[:, None]
    ang = m * theta[None, :]
    cos, sin = jnp.cos(ang), jnp.sin(ang)

    def rot(x):
        x1 = x[..., : D // 2]
        x2 = x[..., D // 2:]
        return jnp.concatenate([-x2, x1], axis=-1)

    qf = q.astype(jnp.float32)
    kf = k.astype(jnp.float32)
    return qf * cos + rot(qf) * sin, kf * cos + rot(kf) * sin


if __name__ == "__main__":
    key = jax.random.PRNGKey(0)

    def run_case(key, B, H, T, D, dtype, atol, rtol):
        kq, kk, key = jax.random.split(key, 3)
        q = jax.random.normal(kq, (B, H, T, D), dtype=jnp.float32).astype(dtype)
        k = jax.random.normal(kk, (B, H, T, D), dtype=jnp.float32).astype(dtype)
        q_out, k_out = rotary_position_embeddings(q, k, rope_theta=10000.0)
        jax.block_until_ready((q_out, k_out))
        q_ref, k_ref = _reference(q, k, rope_theta=10000.0)
        assert q_out.shape == q.shape and k_out.shape == k.shape
        assert q_out.dtype == q.dtype and k_out.dtype == k.dtype
        assert jnp.allclose(q_out.astype(jnp.float32), q_ref, atol=atol, rtol=rtol)
        assert jnp.allclose(k_out.astype(jnp.float32), k_ref, atol=atol, rtol=rtol)
        return key

    # Case 1: D < 128 -> packed-lane path (module-scale example shapes).
    key = run_case(key, 2, 4, 16, 32, jnp.float32, 1e-5, 1e-5)
    # Case 2: D == 128 -> single-roll path.
    key = run_case(key, 1, 2, 8, 128, jnp.float32, 1e-5, 1e-5)
    # Case 3: ragged T (T % R != 0) -> padded, still lane-dense.
    key = run_case(key, 1, 2, 10, 32, jnp.float32, 1e-5, 1e-5)
    # Case 4: bf16 inputs -> bf16 compute on v6e/v7x, f32 compute on v5e.
    key = run_case(key, 2, 4, 32, 64, jnp.bfloat16, 2e-1, 5e-2)

    print("KERNEL_OK")
</pallas_src>

<mosaic_0001>
module attributes {stable_mosaic.version = 11 : i64} {
  func.func @_rope_kernel_packed(%arg0: i32, %arg1: i32, %arg2: memref<4x128xf32, #tpu.memory_space<vmem>>, %arg3: memref<4x128xf32, #tpu.memory_space<vmem>>, %arg4: memref<4x128xf32, #tpu.memory_space<vmem>>, %arg5: memref<4x4x128xf32, #tpu.memory_space<vmem>>, %arg6: memref<4x4x128xf32, #tpu.memory_space<vmem>>, %arg7: memref<4x4x128xf32, #tpu.memory_space<vmem>>, %arg8: memref<4x4x128xf32, #tpu.memory_space<vmem>>) attributes {dimension_semantics = [#tpu.dimension_semantics<parallel>, #tpu.dimension_semantics<parallel>], iteration_bounds = array<i64: 1, 2>, scalar_prefetch = 0 : i64, scratch_operands = 0 : i64, tpu.core_type = #tpu.core_type<tc>, window_params = [{transform_indices = @transform_0, window_bounds = array<i64: 4, 128>}, {transform_indices = @transform_1, window_bounds = array<i64: 4, 128>}, {transform_indices = @transform_2, window_bounds = array<i64: 4, 128>}, {transform_indices = @transform_3, window_bounds = array<i64: 4, 4, 128>}, {transform_indices = @transform_4, window_bounds = array<i64: 4, 4, 128>}, {transform_indices = @transform_5, window_bounds = array<i64: 4, 4, 128>}, {transform_indices = @transform_6, window_bounds = array<i64: 4, 4, 128>}]} {
    %c0 = arith.constant 0 : index
    %c0_0 = arith.constant 0 : index
    %0 = vector.load %arg2[%c0, %c0_0] : memref<4x128xf32, #tpu.memory_space<vmem>>, vector<4x128xf32>
    %c0_1 = arith.constant 0 : index
    %c0_2 = arith.constant 0 : index
    %1 = vector.load %arg3[%c0_1, %c0_2] : memref<4x128xf32, #tpu.memory_space<vmem>>, vector<4x128xf32>
    %c0_3 = arith.constant 0 : index
    %c0_4 = arith.constant 0 : index
    %2 = vector.load %arg4[%c0_3, %c0_4] : memref<4x128xf32, #tpu.memory_space<vmem>>, vector<4x128xf32>
    %c0_5 = arith.constant 0 : index
    %c0_6 = arith.constant 0 : index
    %c0_7 = arith.constant 0 : index
    %3 = vector.load %arg5[%c0_5, %c0_6, %c0_7] : memref<4x4x128xf32, #tpu.memory_space<vmem>>, vector<4x4x128xf32>
    %4 = vector.shape_cast %3 : vector<4x4x128xf32> to vector<16x128xf32>
    %c112_i32 = arith.constant 112 : i32
    %5 = tpu.dynamic_rotate %4 by %c112_i32 dim 1 : vector<16x128xf32>, i32 -> vector<16x128xf32>
    %6 = vector.shape_cast %5 : vector<16x128xf32> to vector<4x4x128xf32>
    %c16_i32 = arith.constant 16 : i32
    %7 = tpu.dynamic_rotate %4 by %c16_i32 dim 1 : vector<16x128xf32>, i32 -> vector<16x128xf32>
    %8 = vector.shape_cast %7 : vector<16x128xf32> to vector<4x4x128xf32>
    %9 = vector.shape_cast %0 : vector<4x128xf32> to vector<1x4x128xf32>
    %10 = vector.broadcast %9 : vector<1x4x128xf32> to vector<4x4x128xf32>
    %11 = arith.mulf %3, %10 : vector<4x4x128xf32>
    %12 = vector.shape_cast %1 : vector<4x128xf32> to vector<1x4x128xf32>
    %13 = vector.broadcast %12 : vector<1x4x128xf32> to vector<4x4x128xf32>
    %14 = arith.mulf %6, %13 : vector<4x4x128xf32>
    %15 = arith.addf %11, %14 : vector<4x4x128xf32>
    %16 = vector.shape_cast %2 : vector<4x128xf32> to vector<1x4x128xf32>
    %17 = vector.broadcast %16 : vector<1x4x128xf32> to vector<4x4x128xf32>
    %18 = arith.mulf %8, %17 : vector<4x4x128xf32>
    %19 = arith.addf %15, %18 : vector<4x4x128xf32>
    %c0_8 = arith.constant 0 : index
    %c0_9 = arith.constant 0 : index
    %c0_10 = arith.constant 0 : index
    %20 = vector.load %arg7[%c0_8, %c0_9, %c0_10] : memref<4x4x128xf32, #tpu.memory_space<vmem>>, vector<4x4x128xf32>
    tpu.vector_store %arg7[%c0_8, %c0_9, %c0_10], %19 {strides = array<i32>} : memref<4x4x128xf32, #tpu.memory_space<vmem>>, vector<4x4x128xf32>,
    %c0_11 = arith.constant 0 : index
    %c0_12 = arith.constant 0 : index
    %c0_13 = arith.constant 0 : index
    %21 = vector.load %arg6[%c0_11, %c0_12, %c0_13] : memref<4x4x128xf32, #tpu.memory_space<vmem>>, vector<4x4x128xf32>
    %22 = vector.shape_cast %21 : vector<4x4x128xf32> to vector<16x128xf32>
    %c112_i32_14 = arith.constant 112 : i32
    %23 = tpu.dynamic_rotate %22 by %c112_i32_14 dim 1 : vector<16x128xf32>, i32 -> vector<16x128xf32>
    %24 = vector.shape_cast %23 : vector<16x128xf32> to vector<4x4x128xf32>
    %c16_i32_15 = arith.constant 16 : i32
    %25 = tpu.dynamic_rotate %22 by %c16_i32_15 dim 1 : vector<16x128xf32>, i32 -> vector<16x128xf32>
    %26 = vector.shape_cast %25 : vector<16x128xf32> to vector<4x4x128xf32>
    %27 = vector.shape_cast %0 : vector<4x128xf32> to vector<1x4x128xf32>
    %28 = vector.broadcast %27 : vector<1x4x128xf32> to vector<4x4x128xf32>
    %29 = arith.mulf %21, %28 : vector<4x4x128xf32>
    %30 = vector.shape_cast %1 : vector<4x128xf32> to vector<1x4x128xf32>
    %31 = vector.broadcast %30 : vector<1x4x128xf32> to vector<4x4x128xf32>
    %32 = arith.mulf %24, %31 : vector<4x4x128xf32>
    %33 = arith.addf %29, %32 : vector<4x4x128xf32>
    %34 = vector.shape_cast %2 : vector<4x128xf32> to vector<1x4x128xf32>
    %35 = vector.broadcast %34 : vector<1x4x128xf32> to vector<4x4x128xf32>
    %36 = arith.mulf %26, %35 : vector<4x4x128xf32>
    %37 = arith.addf %33, %36 : vector<4x4x128xf32>
    %c0_16 = arith.constant 0 : index
    %c0_17 = arith.constant 0 : index
    %c0_18 = arith.constant 0 : index
    %38 = vector.load %arg8[%c0_16, %c0_17, %c0_18] : memref<4x4x128xf32, #tpu.memory_space<vmem>>, vector<4x4x128xf32>
    tpu.vector_store %arg8[%c0_16, %c0_17, %c0_18], %37 {strides = array<i32>} : memref<4x4x128xf32, #tpu.memory_space<vmem>>, vector<4x4x128xf32>,
    return
  }
  func.func @transform_0(%arg0: i32, %arg1: i32) -> (i32, i32) {
    %c0_i32 = arith.constant 0 : i32
    %c0_i32_0 = arith.constant 0 : i32
    return %arg0, %c0_i32 : i32, i32
  }
  func.func @transform_1(%arg0: i32, %arg1: i32) -> (i32, i32) {
    %c0_i32 = arith.constant 0 : i32
    %c0_i32_0 = arith.constant 0 : i32
    return %arg0, %c0_i32 : i32, i32
  }
  func.func @transform_2(%arg0: i32, %arg1: i32) -> (i32, i32) {
    %c0_i32 = arith.constant 0 : i32
    %c0_i32_0 = arith.constant 0 : i32
    return %arg0, %c0_i32 : i32, i32
  }
  func.func @transform_3(%arg0: i32, %arg1: i32) -> (i32, i32, i32) {
    %c0_i32 = arith.constant 0 : i32
    %c0_i32_0 = arith.constant 0 : i32
    return %arg1, %arg0, %c0_i32 : i32, i32, i32
  }
  func.func @transform_4(%arg0: i32, %arg1: i32) -> (i32, i32, i32) {
    %c0_i32 = arith.constant 0 : i32
    %c0_i32_0 = arith.constant 0 : i32
    return %arg1, %arg0, %c0_i32 : i32, i32, i32
  }
  func.func @transform_5(%arg0: i32, %arg1: i32) -> (i32, i32, i32) {
    %c0_i32 = arith.constant 0 : i32
    %c0_i32_0 = arith.constant 0 : i32
    return %arg1, %arg0, %c0_i32 : i32, i32, i32
  }
  func.func @transform_6(%arg0: i32, %arg1: i32) -> (i32, i32, i32) {
    %c0_i32 = arith.constant 0 : i32
    %c0_i32_0 = arith.constant 0 : i32
    return %arg1, %arg0, %c0_i32 : i32, i32, i32
  }
}

</mosaic_0001>

<bundles_post_ra>
// kernel: _rotary_impl.1
= control target key start
LH: loop header
LB: loop body
LE: loop exit
PB: predicated region body
PF: predicated region fallthrough
CT: control target
= control target key end

     0   :  { %s798_s21 = smov 0   ;;  %s800_s22 = smov 0   ;;  %s868_s0 = inlined_call_operand.vmem [shape: f32[4,128], index: 0, kind: input, shape index: {}]   ;;  %s869_s1 = inlined_call_operand.vmem [shape: f32[4,128], index: 1, kind: input, shape index: {}]   ;;  %s870_s2 = inlined_call_operand.vmem [shape: f32[4,128], index: 2, kind: input, shape index: {}]   ;;  %s871_s3 = inlined_call_operand.vmem [shape: f32[8,4,128], index: 3, kind: input, shape index: {}, may-alias: {3,5}]   ;;  %s872_s4 = inlined_call_operand.vmem [shape: f32[8,4,128], index: 4, kind: input, shape index: {}, may-alias: {4,6}]   ;;  %s873_s5 = inlined_call_operand.vmem [shape: f32[8,4,128], index: 5, kind: output, shape index: {0}, may-alias: {3,5}]   ;;  %s874_s6 = inlined_call_operand.vmem [shape: f32[8,4,128], index: 6, kind: output, shape index: {1}, may-alias: {4,6}]  }
   0x1   :  { %s802_s23 = smov 0  }
   0x2 LB: > { %s26_s24 = sadd.s32 1, %s755_s22  ;;  %p696_p0 = scmp.ge.s32.totalorder %s759_s23, 1  ;;  %s759_s23 = sphi %s802_s23, %s17_s23   ;;  %s755_s22 = sphi %s800_s22, %s876_s22   ;;  %s751_s21 = sphi %s798_s21, %s875_s21  }
   0x3   : > { %p27_p1 = scmp.ge.s32.totalorder %s26_s24, 2  ;;  %p280_p2 = scmp.lt.s32.totalorder %s759_s23, 3 }
   0x5   : > { %s878_s24 = smov (%p27_p1, %s26_s24), 0  ;;  %p281_p3 = pnand %p696_p0, %p280_p2 }
   0x6   : > { %s697_s25 = sshll.u32 (!%p281_p3), %s751_s21, 2  ;;  %s761_s9 = smov (!%p281_p3), 112  }
   0x7   : > { %284 = sbr.rel (%p281_p3) target bundleno = 153 (0x99), region = 40  ;;  %p357_p4 = scmp.lt.s32.totalorder (!%p281_p3), %s697_s25, 7 }
   0x8   : > { %s762_s10 = smov (!%p281_p3), 16  }
   0xc   : > { %s880_s25 = smov (!%p357_p4, %s697_s25), 7  ;;  %v392_v12 = vld [vmem:[%s868_s0] sm:$0xf] }
   0xd   : > { %s816_s26 = sshll.u32 %s880_s25, 2  ;;  %v393_v13 = vld [vmem:[%s869_s1] sm:$0xf] }
   0xe   : > { %s363_s29 = scalar_lea.vmem %s871_s3, %s816_s26  ;;  %s372_s8 = scalar_lea.vmem %s872_s4, %s816_s26  ;;  %v394_v19 = vld [vmem:[%s870_s2] sm:$0xf] }
   0xf   : > { %v397_v0 = vld [vmem:[%s363_s29 + $0x8] sm:$0xf]  ;;  %v822_v1 = vld [vmem:[%s363_s29 + $0xc] sm:$0xf]  ;;  %v395_v2 = vld [vmem:[%s363_s29] sm:$0xf]  ;;  %s842_s19 = scalar_lea.vmem %s873_s5, %s816_s26  ;;  %s849_s25 = scalar_lea.vmem %s874_s6, %s816_s26 }
  0x10   : > { %v404_v3 = vcombine.low %v397_v0, %v822_v1  ;;  %v396_v4 = vld [vmem:[%s363_s29 + $0x4] sm:$0xf]  ;;  %v451_v5 = vld [vmem:[%s372_s8] sm:$0xf]  ;;  %v453_v9 = vld [vmem:[%s372_s8 + $0x8] sm:$0xf]  ;;  %v427_v15 = vmul.f32 %v395_v2, %v392_v12  ;;  %v429_v43 = vmul.f32 %v397_v0, %v392_v12  ;;  %v430_v51 = vmul.f32 %v822_v1, %v392_v12 }
  0x11   : > { %v452_v6 = vld [vmem:[%s372_s8 + $0x4] sm:$0xf]  ;;  %v403_v7 = vcombine.low %v395_v2, %v396_v4  ;;  %v454_v10 = vld [vmem:[%s372_s8 + $0xc] sm:$0xf]  ;;  %v428_v20 = vmul.f32 %v396_v4, %v392_v12  ;;  %v483_v26 = vmul.f32 %v451_v5, %v392_v12  ;;  %v485_v37 = vmul.f32 %v453_v9, %v392_v12 }
  0x12   : > { %409 = vrot.lane.b32.xlu1 %v404_v3, %s761_s9  ;;  %v459_v8 = vcombine.low %v451_v5, %v452_v6  ;;  %v460_v11 = vcombine.low %v453_v9, %v454_v10  ;;  %v484_v33 = vmul.f32 %v452_v6, %v392_v12  ;;  %v486_v50 = vmul.f32 %v454_v10, %v392_v12 }
  0x13   : > { %407 = vrot.lane.b32.xlu0 %v403_v7, %s761_s9 }
  0x16   : > { %417 = vrot.lane.b32.xlu1 %v403_v7, %s762_s10 }
  0x17   : > { %463 = vrot.lane.b32.xlu0 %v459_v8, %s761_s9 }
  0x1a   : > { %473 = vrot.lane.b32.xlu1 %v459_v8, %s762_s10 }
  0x1b   : > { %465 = vrot.lane.b32.xlu0 %v460_v11, %s761_s9 }
  0x1e   : > { %475 = vrot.lane.b32.xlu1 %v460_v11, %s762_s10 }
  0x1f   : > { %419 = vrot.lane.b32.xlu0 %v404_v3, %s762_s10 }
  0x84   : > { %v410_v14 = vpop.permute.xlu1 %409 }
  0x85   : > { %v408_v16 = vpop.permute.xlu0 %407  ;;  %v414_v34 = vcombine.high %v410_v14, %v410_v14  ;;  %v433_v44 = vmul.f32 %v410_v14, %v393_v13 }
  0x86   : > { %v413_v17 = vcombine.high %v408_v16, %v408_v16  ;;  %v431_v18 = vmul.f32 %v408_v16, %v393_v13 }
  0x87   : > { %v434_v52 = vmul.f32 %v414_v34, %v393_v13  ;;  %v437_v60 = vadd.f32 %v433_v44, %v429_v43 }
  0x88   : > { %v432_v21 = vmul.f32 %v413_v17, %v393_v13  ;;  %v418_v22 = vpop.permute.xlu1 %417  ;;  %v435_v23 = vadd.f32 %v431_v18, %v427_v15 }
  0x89   : > { %v423_v24 = vcombine.high %v418_v22, %v418_v22  ;;  %v439_v25 = vmul.f32 %v418_v22, %v394_v19  ;;  %v464_v27 = vpop.permute.xlu0 %463  ;;  %v438_v2 = vadd.f32 %v434_v52, %v430_v51 }
  0x8a   : > { %v469_v28 = vcombine.high %v464_v27, %v464_v27  ;;  %v487_v29 = vmul.f32 %v464_v27, %v393_v13  ;;  %v436_v30 = vadd.f32 %v432_v21, %v428_v20 }
  0x8b   : > { %v440_v31 = vmul.f32 %v423_v24, %v394_v19  ;;  %v443_v32 = vadd.f32 %v439_v25, %v435_v23 }
  0x8c   : > { %v488_v35 = vmul.f32 %v469_v28, %v393_v13  ;;  %v474_v36 = vpop.permute.xlu1 %473  ;;  %v491_v39 = vadd.f32 %v487_v29, %v483_v26 }
  0x8d   : > { %v444_v38 = vadd.f32 %v440_v31, %v436_v30  ;;  %447 = vst [vmem:[%s842_s19] sm:$0xf] %v443_v32  ;;  %v479_v40 = vcombine.high %v474_v36, %v474_v36  ;;  %v495_v41 = vmul.f32 %v474_v36, %v394_v19  ;;  %v466_v42 = vpop.permute.xlu0 %465 }
  0x8e   : > { %v470_v45 = vcombine.high %v466_v42, %v466_v42  ;;  %v489_v46 = vmul.f32 %v466_v42, %v393_v13  ;;  %v492_v47 = vadd.f32 %v488_v35, %v484_v33 }
  0x8f   : > { %448 = vst [vmem:[%s842_s19 + $0x4] sm:$0xf] %v444_v38  ;;  %v496_v48 = vmul.f32 %v479_v40, %v394_v19  ;;  %v499_v49 = vadd.f32 %v495_v41, %v491_v39 }
  0x90   : > { %v490_v53 = vmul.f32 %v470_v45, %v393_v13  ;;  %v476_v54 = vpop.permute.xlu1 %475  ;;  %v493_v56 = vadd.f32 %v489_v46, %v485_v37 }
  0x91   : > { %v500_v55 = vadd.f32 %v496_v48, %v492_v47  ;;  %503 = vst [vmem:[%s849_s25] sm:$0xf] %v499_v49  ;;  %v480_v57 = vcombine.high %v476_v54, %v476_v54  ;;  %v497_v58 = vmul.f32 %v476_v54, %v394_v19  ;;  %v420_v59 = vpop.permute.xlu0 %419 }
  0x92   : > { %v424_v61 = vcombine.high %v420_v59, %v420_v59  ;;  %v441_v62 = vmul.f32 %v420_v59, %v394_v19  ;;  %v494_v63 = vadd.f32 %v490_v53, %v486_v50 }
  0x93   : > { %504 = vst [vmem:[%s849_s25 + $0x4] sm:$0xf] %v500_v55  ;;  %v498_v0 = vmul.f32 %v480_v57, %v394_v19  ;;  %v501_v1 = vadd.f32 %v497_v58, %v493_v56 }
  0x94   : > { %v442_v3 = vmul.f32 %v424_v61, %v394_v19  ;;  %v445_v4 = vadd.f32 %v441_v62, %v437_v60 }
  0x95   : > { %v502_v5 = vadd.f32 %v498_v0, %v494_v63  ;;  %505 = vst [vmem:[%s849_s25 + $0x8] sm:$0xf] %v501_v1 }
  0x96   : > { %v446_v6 = vadd.f32 %v442_v3, %v438_v2  ;;  %449 = vst [vmem:[%s842_s19 + $0x8] sm:$0xf] %v445_v4 }
  0x97   : > { %506 = vst [vmem:[%s849_s25 + $0xc] sm:$0xf] %v502_v5 }
  0x98   : > { %450 = vst [vmem:[%s842_s19 + $0xc] sm:$0xf] %v446_v6 }
  0x99 PF: > { %s17_s23 = sadd.s32 1, %s759_s23   ;;  %s875_s21 = smov %s755_s22 }
  0x9a   : > { %p14_p5 = scmp.ge.s32.totalorder %s17_s23, 4   ;;  %s876_s22 = smov %s878_s24 }
  0x9c   :  { %16 = sbr.rel (!%p14_p5) target bundleno = 2 (0x2), region = 94 }

</bundles_post_ra>
